<compile_context>
chip_gen: v5e
topology: v5e:2x2
jax: 0.10.0
libtpu: 0.0.40
codegen_flags: <defaults>
</compile_context>

<pallas_src>
import functools
import math

import jax
import jax.numpy as jnp
from jax.experimental import pallas as pl
from jax.experimental.pallas import tpu as pltpu

BN_EPS = 1e-5
N_DROPOUTS = 5  # the module averages 5 dropout+myfc passes (identity in eval)
LANE = 128


def _swish(x):
    return x * jax.nn.sigmoid(x)


def _fold_bn(w, b, gamma, beta, mean, var):
    """Fold an inference-mode BatchNorm1d into the preceding Linear."""
    scale = gamma * jax.lax.rsqrt(var + BN_EPS)          # (1, D)
    return w * scale, (b - mean) * scale + beta


def _vmem_bytes(shape, dtype):
    """Approximate Mosaic VMEM footprint of one buffer of `shape`."""
    itemsize = jnp.dtype(dtype).itemsize
    sub = max(8, 32 // itemsize)               # 8 rows for f32, 16 for bf16
    lead = math.prod(shape[:-2]) if len(shape) > 2 else 1
    rows = -(-shape[-2] // sub) * sub
    cols = -(-shape[-1] // LANE) * LANE
    return int(lead * rows * cols * itemsize)


def melanoma_head_kernel(
    feat_ref,       # (TB, C, HW)  trunk features (NCHW flattened), HW on lanes
    meta_ref,       # (TB, 1, M)   tabular meta features
    w1_ref,         # (M, D1)      meta Linear1 (BN folded)
    w2_ref,         # (D1, D2)     meta Linear2 (BN folded)
    wfc_img_ref,    # (C, O_pad)   myfc rows for image features (pre-scaled 1/HW)
    wfc_meta_ref,   # (D2, O_pad)  myfc rows for meta features
    bias_ref,       # (3, Wp)      packed biases: row0=b1, row1=b2, row2=bfc
    out_ref,        # (TB, 1, O_pad)
    *, d1, d2, o_pad, hw, n_pool_chunks,
):
    tb = feat_ref.shape[0]
    c = feat_ref.shape[1]

    # ---- enet.avg_pool(x).squeeze(-1).squeeze(-1): global average pool.
    # f32 accumulation, chunked over the HW lane axis so we never materialize
    # a full f32 copy of the (possibly bf16) feature tile.  1/HW is folded
    # into wfc_img in the wrapper, so `pooled` here is the raw sum. ----
    pooled = jnp.zeros((tb, c), jnp.float32)
    chunk = -(-hw // n_pool_chunks)
    for start in range(0, hw, chunk):
        width = min(chunk, hw - start)
        pooled = pooled + jnp.sum(
            feat_ref[:, :, pl.ds(start, width)].astype(jnp.float32), axis=-1)

    biases = bias_ref[...]
    b1 = biases[0:1, :d1]                                               # (1, D1)
    b2 = biases[1:2, :d2]                                               # (1, D2)
    bfc = biases[2:3, :o_pad]                                           # (1, O_pad)

    # ---- meta branch: (Linear+BN) -> Swish -> Dropout(id) -> (Linear+BN) -> Swish
    meta = meta_ref[...].reshape(meta_ref.shape[0], meta_ref.shape[2])  # (TB, M)
    h = jnp.dot(meta, w1_ref[...], preferred_element_type=jnp.float32) + b1
    h = _swish(h)
    h = jnp.dot(h, w2_ref[...], preferred_element_type=jnp.float32) + b2
    h = _swish(h)                                                       # (TB, D2)

    # ---- torch.cat((x, x_meta), 1) @ myfc == split matmul; the 5x
    # dropout+myfc accumulate / 5 is the identity in eval mode. ----
    logits = (jnp.dot(pooled, wfc_img_ref[...], preferred_element_type=jnp.float32)
              + jnp.dot(h, wfc_meta_ref[...], preferred_element_type=jnp.float32)
              + bfc)                                                    # (TB, O_pad)
    out_ref[...] = logits.reshape(out_ref.shape)


def seresnext_melanoma_head(feat_nchw, x_meta, p, *, feat_dtype=jnp.bfloat16):
    """Head forward from `enet.avg_pool` onward.

    `feat_nchw` is the backbone trunk feature map [B, C, H, W].  It is consumed
    in its native NCHW layout, flattened to [B, C, HW] (a free view -- no HBM
    transpose round trip).  bf16 features halve the dominant HBM traffic; best
    case the trunk already emits bf16 and the cast below is a no-op.
    Accumulation stays f32 throughout.
    """
    B, C, H, W = feat_nchw.shape
    HW = H * W
    M = x_meta.shape[1]
    D1 = p["w1"].shape[1]
    D2 = p["w2"].shape[1]
    O = p["bfc"].shape[1]
    O_pad = pl.cdiv(O, LANE) * LANE

    feat = feat_nchw.reshape(B, C, HW)
    if feat_dtype is not None and feat.dtype != jnp.dtype(feat_dtype):
        feat = feat.astype(feat_dtype)
    itemsize = jnp.dtype(feat.dtype).itemsize
    meta3 = x_meta.reshape(B, 1, M).astype(jnp.float32)

    # --- fold BN1/BN2 (inference) into the meta Linear weights/biases ---
    w1f, b1f = _fold_bn(p["w1"], p["b1"], p["g1"], p["be1"], p["m1"], p["v1"])
    w2f, b2f = _fold_bn(p["w2"], p["b2"], p["g2"], p["be2"], p["m2"], p["v2"])

    # --- lane-dense (padded-to-128) myfc columns; 1/HW folded into the image
    #     half so the kernel's pool only needs the raw sum ---
    wfc_img = jnp.zeros((C, O_pad), jnp.float32).at[:, :O].set(p["wfc_img"] / HW)
    wfc_meta = jnp.zeros((D2, O_pad), jnp.float32).at[:, :O].set(p["wfc_meta"])

    # --- pack the three small biases into one lane-aligned buffer ---
    Wp = pl.cdiv(max(D1, D2, O_pad), LANE) * LANE
    bias_pack = jnp.zeros((3, Wp), jnp.float32)
    bias_pack = bias_pack.at[0, :D1].set(b1f[0])
    bias_pack = bias_pack.at[1, :D2].set(b2f[0])
    bias_pack = bias_pack.at[2, :O].set(p["bfc"][0])

    # --- generation-aware VMEM budget / batch tile -----------------------
    try:
        info = pltpu.get_tpu_info()
        vmem_cap = int(getattr(info, "vmem_capacity_bytes", 0) or 64 * 2**20)
    except Exception:
        vmem_cap = 64 * 2**20          # conservative default
    two_tc = vmem_cap <= 80 * 2**20    # v7x: 64 MiB VMEM, 2 TensorCores/chip
    vmem_limit = int(min(0.75 * vmem_cap, 100 * 2**20))  # ~48 MiB v7x, ~96 MiB v5e/v6e

    per_sample_vmem = _vmem_bytes((C, HW), feat.dtype)
    fixed = 2 * (_vmem_bytes((M, D1), jnp.float32)
                 + _vmem_bytes((D1, D2), jnp.float32)
                 + _vmem_bytes((C, O_pad), jnp.float32)
                 + _vmem_bytes((D2, O_pad), jnp.float32)
                 + _vmem_bytes((3, Wp), jnp.float32))
    slack = 6 * 2**20                  # Mosaic scratch, meta/out blocks, temps
    feat_budget = max(per_sample_vmem, vmem_limit - fixed - slack)
    # 2x double-buffered feature tile + ~0.5x for the chunked f32 pool temps
    tb_cap = max(1, int(feat_budget // (2.5 * per_sample_vmem)))

    n_tiles = pl.cdiv(B, min(B, tb_cap))
    if two_tc and B > 1:
        n_tiles = max(2, n_tiles)      # keep both v7x TensorCores busy
        if n_tiles % 2:
            n_tiles += 1               # even split -> balanced megacore work
    TB = pl.cdiv(B, n_tiles)
    B_pad = n_tiles * TB
    if B_pad != B:
        feat = jnp.pad(feat, ((0, B_pad - B), (0, 0), (0, 0)))
        meta3 = jnp.pad(meta3, ((0, B_pad - B), (0, 0), (0, 0)))

    need = fixed + slack + int(2.5 * TB * per_sample_vmem)
    vmem_limit = int(min(max(vmem_limit, need), vmem_cap))

    # f32 pool temp stays <= ~half the feature tile (bf16: 4 chunks; f32: 1)
    n_pool_chunks = 1 if itemsize >= 4 else min(4, HW)

    # TODO(synk): for very large HW*C (e.g. 512px+ inputs on v7x) add an
    # "arbitrary" HW-chunk reduction grid axis so TB need not shrink, and
    # single-buffer the grid-invariant weights (pl.Buffered(1)) to reclaim
    # ~1-2 MiB of VMEM; unnecessary at these sizes.

    def rep(shape):
        zero = (0,) * len(shape)
        return pl.BlockSpec(shape, lambda i, _z=zero: _z)

    kernel = functools.partial(
        melanoma_head_kernel, d1=D1, d2=D2, o_pad=O_pad, hw=HW,
        n_pool_chunks=n_pool_chunks)

    weight_bytes = 4 * (M * D1 + D1 * D2 + (C + D2) * O_pad + 3 * Wp)
    cost = pl.CostEstimate(
        flops=int(2 * B_pad * (C * O_pad + M * D1 + D1 * D2 + D2 * O_pad)
                  + B_pad * C * HW),
        transcendentals=int(B_pad * (D1 + D2)),
        bytes_accessed=int(B_pad * C * HW * itemsize + B_pad * M * 4
                           + weight_bytes + B_pad * O_pad * 4),
    )

    out = pl.pallas_call(
        kernel,
        out_shape=jax.ShapeDtypeStruct((B_pad, 1, O_pad), jnp.float32),
        grid=(n_tiles,),
        in_specs=[
            pl.BlockSpec((TB, C, HW), lambda i: (i, 0, 0)),   # streamed features
            pl.BlockSpec((TB, 1, M), lambda i: (i, 0, 0)),    # per-tile meta
            rep((M, D1)), rep((D1, D2)),
            rep((C, O_pad)), rep((D2, O_pad)),
            rep((3, Wp)),
        ],
        out_specs=pl.BlockSpec((TB, 1, O_pad), lambda i: (i, 0, 0)),
        compiler_params=pltpu.CompilerParams(
            dimension_semantics=("parallel",),
            vmem_limit_bytes=vmem_limit,
        ),
        cost_estimate=cost,
    )(feat, meta3, w1f, w2f, wfc_img, wfc_meta, bias_pack)

    return out[:B, 0, :O]


def init_params(key, C, M, D1, D2, O):
    ks = jax.random.split(key, 9)

    def linear(k, fin, fout):
        bound = float(1.0 / (fin ** 0.5))
        kw, kb = jax.random.split(k)
        w = jax.random.uniform(kw, (fin, fout), jnp.float32, -bound, bound)
        b = jax.random.uniform(kb, (1, fout), jnp.float32, -bound, bound)
        return w, b

    def bn(k, d):
        k1, k2, k3, k4 = jax.random.split(k, 4)
        g = 1.0 + 0.1 * jax.random.normal(k1, (1, d), jnp.float32)
        be = 0.1 * jax.random.normal(k2, (1, d), jnp.float32)
        m = 0.1 * jax.random.normal(k3, (1, d), jnp.float32)
        v = jax.random.uniform(k4, (1, d), jnp.float32, 0.5, 1.5)
        return g, be, m, v

    w1, b1 = linear(ks[0], M, D1)
    g1, be1, m1, v1 = bn(ks[1], D1)
    w2, b2 = linear(ks[2], D1, D2)
    g2, be2, m2, v2 = bn(ks[3], D2)
    wfc, bfc = linear(ks[4], C + D2, O)
    return dict(w1=w1, b1=b1, g1=g1, be1=be1, m1=m1, v1=v1,
                w2=w2, b2=b2, g2=g2, be2=be2, m2=m2, v2=v2,
                wfc_img=wfc[:C], wfc_meta=wfc[C:], bfc=bfc)


def reference(feat_nchw, x_meta, p):
    """Pure-JAX reference with the ORIGINAL (unfolded) module math."""
    pooled = feat_nchw.mean(axis=(2, 3))
    h = x_meta @ p["w1"] + p["b1"]
    h = p["g1"] * (h - p["m1"]) / jnp.sqrt(p["v1"] + BN_EPS) + p["be1"]
    h = h * jax.nn.sigmoid(h)
    h = h @ p["w2"] + p["b2"]
    h = p["g2"] * (h - p["m2"]) / jnp.sqrt(p["v2"] + BN_EPS) + p["be2"]
    h = h * jax.nn.sigmoid(h)
    x = jnp.concatenate([pooled, h], axis=1)
    wfc = jnp.concatenate([p["wfc_img"], p["wfc_meta"]], axis=0)
    out = sum(x @ wfc + p["bfc"] for _ in range(N_DROPOUTS)) / N_DROPOUTS
    return out


if __name__ == "__main__":
    # Small shapes consistent with the module:
    #   backbone trunk feature map: [B=2, C=64, H=4, W=4]
    #   n_meta_features=8, n_meta_dim=[32, 16], out_dim=8
    B, C, H, W = 2, 64, 4, 4
    M, D1, D2, O = 8, 32, 16, 8

    key = jax.random.PRNGKey(0)
    k_feat, k_meta, k_p = jax.random.split(key, 3)
    feat = jax.random.normal(k_feat, (B, C, H, W), jnp.float32)
    x_meta = jax.random.normal(k_meta, (B, M), jnp.float32)
    params = init_params(k_p, C, M, D1, D2, O)

    ref = reference(feat, x_meta, params)

    # Default path: trunk emits bf16 features (no wrapper-side cast/transpose
    # HBM round trip); accumulation in the kernel is f32.
    feat_bf16 = feat.astype(jnp.bfloat16)
    out = seresnext_melanoma_head(feat_bf16, x_meta, params)
    out = jax.block_until_ready(out)
    assert out.shape == (B, O), out.shape
    # bf16-quantized trunk features -> looser tolerance than the pure-f32 path
    assert jnp.allclose(out, ref, rtol=2e-2, atol=2e-2), jnp.max(jnp.abs(out - ref))

    # f32 path: exact-math check against the reference.
    out_f32 = seresnext_melanoma_head(feat, x_meta, params, feat_dtype=jnp.float32)
    out_f32 = jax.block_until_ready(out_f32)
    assert jnp.allclose(out_f32, ref, rtol=1e-4, atol=1e-4), \
        jnp.max(jnp.abs(out_f32 - ref))

    print("KERNEL_OK")
</pallas_src>

<mosaic_0001>
module attributes {stable_mosaic.version = 11 : i64} {
  func.func @melanoma_head_kernel(%arg0: i32, %arg1: memref<1x64x16xbf16, #tpu.memory_space<vmem>>, %arg2: memref<1x1x8xf32, #tpu.memory_space<vmem>>, %arg3: memref<8x32xf32, #tpu.memory_space<vmem>>, %arg4: memref<32x16xf32, #tpu.memory_space<vmem>>, %arg5: memref<64x128xf32, #tpu.memory_space<vmem>>, %arg6: memref<16x128xf32, #tpu.memory_space<vmem>>, %arg7: memref<3x128xf32, #tpu.memory_space<vmem>>, %arg8: memref<1x1x128xf32, #tpu.memory_space<vmem>>) attributes {dimension_semantics = [#tpu.dimension_semantics<parallel>], iteration_bounds = array<i64: 2>, scalar_prefetch = 0 : i64, scratch_operands = 0 : i64, tpu.core_type = #tpu.core_type<tc>, window_params = [{transform_indices = @transform_0, window_bounds = array<i64: 1, 64, 16>}, {transform_indices = @transform_1, window_bounds = array<i64: 1, 1, 8>}, {pipeline_mode = #tpu.pipeline_mode<synchronous>, transform_indices = @transform_2, window_bounds = array<i64: 8, 32>}, {pipeline_mode = #tpu.pipeline_mode<synchronous>, transform_indices = @transform_3, window_bounds = array<i64: 32, 16>}, {pipeline_mode = #tpu.pipeline_mode<synchronous>, transform_indices = @transform_4, window_bounds = array<i64: 64, 128>}, {pipeline_mode = #tpu.pipeline_mode<synchronous>, transform_indices = @transform_5, window_bounds = array<i64: 16, 128>}, {pipeline_mode = #tpu.pipeline_mode<synchronous>, transform_indices = @transform_6, window_bounds = array<i64: 3, 128>}, {transform_indices = @transform_7, window_bounds = array<i64: 1, 1, 128>}]} {
    %cst = arith.constant 0.000000e+00 : f32
    %0 = vector.broadcast %cst : f32 to vector<1x64xf32>
    %c0 = arith.constant 0 : index
    %c0_0 = arith.constant 0 : index
    %c0_1 = arith.constant 0 : index
    %1 = vector.load %arg1[%c0, %c0_0, %c0_1] : memref<1x64x16xbf16, #tpu.memory_space<vmem>>, vector<1x64x4xbf16>
    %2 = arith.extf %1 : vector<1x64x4xbf16> to vector<1x64x4xf32>
    %cst_2 = arith.constant dense<0.000000e+00> : vector<1x64xf32>
    %3 = vector.multi_reduction <add>, %2, %cst_2 [2] : vector<1x64x4xf32> to vector<1x64xf32>
    %4 = arith.addf %0, %3 : vector<1x64xf32>
    %c0_3 = arith.constant 0 : index
    %c0_4 = arith.constant 0 : index
    %c4 = arith.constant 4 : index
    %5 = vector.load %arg1[%c0_3, %c0_4, %c4] : memref<1x64x16xbf16, #tpu.memory_space<vmem>>, vector<1x64x4xbf16>
    %6 = arith.extf %5 : vector<1x64x4xbf16> to vector<1x64x4xf32>
    %cst_5 = arith.constant dense<0.000000e+00> : vector<1x64xf32>
    %7 = vector.multi_reduction <add>, %6, %cst_5 [2] : vector<1x64x4xf32> to vector<1x64xf32>
    %8 = arith.addf %4, %7 : vector<1x64xf32>
    %c0_6 = arith.constant 0 : index
    %c0_7 = arith.constant 0 : index
    %c8 = arith.constant 8 : index
    %9 = vector.load %arg1[%c0_6, %c0_7, %c8] : memref<1x64x16xbf16, #tpu.memory_space<vmem>>, vector<1x64x4xbf16>
    %10 = arith.extf %9 : vector<1x64x4xbf16> to vector<1x64x4xf32>
    %cst_8 = arith.constant dense<0.000000e+00> : vector<1x64xf32>
    %11 = vector.multi_reduction <add>, %10, %cst_8 [2] : vector<1x64x4xf32> to vector<1x64xf32>
    %12 = arith.addf %8, %11 : vector<1x64xf32>
    %c0_9 = arith.constant 0 : index
    %c0_10 = arith.constant 0 : index
    %c12 = arith.constant 12 : index
    %13 = vector.load %arg1[%c0_9, %c0_10, %c12] : memref<1x64x16xbf16, #tpu.memory_space<vmem>>, vector<1x64x4xbf16>
    %14 = arith.extf %13 : vector<1x64x4xbf16> to vector<1x64x4xf32>
    %cst_11 = arith.constant dense<0.000000e+00> : vector<1x64xf32>
    %15 = vector.multi_reduction <add>, %14, %cst_11 [2] : vector<1x64x4xf32> to vector<1x64xf32>
    %16 = arith.addf %12, %15 : vector<1x64xf32>
    %c0_12 = arith.constant 0 : index
    %c0_13 = arith.constant 0 : index
    %17 = vector.load %arg7[%c0_12, %c0_13] : memref<3x128xf32, #tpu.memory_space<vmem>>, vector<3x128xf32>
    %18 = vector.extract_strided_slice %17 {offsets = [0, 0], sizes = [1, 32], strides = [1, 1]} : vector<3x128xf32> to vector<1x32xf32>
    %19 = vector.extract_strided_slice %17 {offsets = [1, 0], sizes = [1, 16], strides = [1, 1]} : vector<3x128xf32> to vector<1x16xf32>
    %20 = vector.extract_strided_slice %17 {offsets = [2, 0], sizes = [1, 128], strides = [1, 1]} : vector<3x128xf32> to vector<1x128xf32>
    %c0_14 = arith.constant 0 : index
    %c0_15 = arith.constant 0 : index
    %c0_16 = arith.constant 0 : index
    %21 = vector.load %arg2[%c0_14, %c0_15, %c0_16] : memref<1x1x8xf32, #tpu.memory_space<vmem>>, vector<1x1x8xf32>
    %22 = vector.shape_cast %21 : vector<1x1x8xf32> to vector<1x8xf32>
    %c0_17 = arith.constant 0 : index
    %c0_18 = arith.constant 0 : index
    %23 = vector.load %arg3[%c0_17, %c0_18] : memref<8x32xf32, #tpu.memory_space<vmem>>, vector<8x32xf32>
    %cst_19 = arith.constant dense<0.000000e+00> : vector<1x32xf32>
    %24 = tpu.matmul %22, %23, %cst_19 {dimension_numbers = #tpu.dot_dimension_numbers<[1], [0], [0], [1], [0, 0, 1, 1], [], []>} : vector<1x8xf32>, vector<8x32xf32>, vector<1x32xf32> -> vector<1x32xf32>
    %25 = arith.addf %24, %18 : vector<1x32xf32>
    %26 = arith.negf %25 : vector<1x32xf32>
    %27 = math.exp %26 : vector<1x32xf32>
    %cst_20 = arith.constant 1.000000e+00 : f32
    %28 = vector.broadcast %cst_20 : f32 to vector<1x32xf32>
    %29 = arith.addf %28, %27 : vector<1x32xf32>
    %30 = arith.divf %28, %29 : vector<1x32xf32>
    %31 = arith.mulf %25, %30 : vector<1x32xf32>
    %c0_21 = arith.constant 0 : index
    %c0_22 = arith.constant 0 : index
    %32 = vector.load %arg4[%c0_21, %c0_22] : memref<32x16xf32, #tpu.memory_space<vmem>>, vector<32x16xf32>
    %cst_23 = arith.constant dense<0.000000e+00> : vector<1x16xf32>
    %33 = tpu.matmul %31, %32, %cst_23 {dimension_numbers = #tpu.dot_dimension_numbers<[1], [0], [0], [1], [0, 0, 1, 1], [], []>} : vector<1x32xf32>, vector<32x16xf32>, vector<1x16xf32> -> vector<1x16xf32>
    %34 = arith.addf %33, %19 : vector<1x16xf32>
    %35 = arith.negf %34 : vector<1x16xf32>
    %36 = math.exp %35 : vector<1x16xf32>
    %cst_24 = arith.constant 1.000000e+00 : f32
    %37 = vector.broadcast %cst_24 : f32 to vector<1x16xf32>
    %38 = arith.addf %37, %36 : vector<1x16xf32>
    %39 = arith.divf %37, %38 : vector<1x16xf32>
    %40 = arith.mulf %34, %39 : vector<1x16xf32>
    %c0_25 = arith.constant 0 : index
    %c0_26 = arith.constant 0 : index
    %41 = vector.load %arg5[%c0_25, %c0_26] : memref<64x128xf32, #tpu.memory_space<vmem>>, vector<64x128xf32>
    %cst_27 = arith.constant dense<0.000000e+00> : vector<1x128xf32>
    %42 = tpu.matmul %16, %41, %cst_27 {dimension_numbers = #tpu.dot_dimension_numbers<[1], [0], [0], [1], [0, 0, 1, 1], [], []>} : vector<1x64xf32>, vector<64x128xf32>, vector<1x128xf32> -> vector<1x128xf32>
    %c0_28 = arith.constant 0 : index
    %c0_29 = arith.constant 0 : index
    %43 = vector.load %arg6[%c0_28, %c0_29] : memref<16x128xf32, #tpu.memory_space<vmem>>, vector<16x128xf32>
    %cst_30 = arith.constant dense<0.000000e+00> : vector<1x128xf32>
    %44 = tpu.matmul %40, %43, %cst_30 {dimension_numbers = #tpu.dot_dimension_numbers<[1], [0], [0], [1], [0, 0, 1, 1], [], []>} : vector<1x16xf32>, vector<16x128xf32>, vector<1x128xf32> -> vector<1x128xf32>
    %45 = arith.addf %42, %44 : vector<1x128xf32>
    %46 = arith.addf %45, %20 : vector<1x128xf32>
    %47 = vector.shape_cast %46 : vector<1x128xf32> to vector<1x1x128xf32>
    %c0_31 = arith.constant 0 : index
    %c0_32 = arith.constant 0 : index
    %c0_33 = arith.constant 0 : index
    %48 = vector.load %arg8[%c0_31, %c0_32, %c0_33] : memref<1x1x128xf32, #tpu.memory_space<vmem>>, vector<1x1x128xf32>
    tpu.vector_store %arg8[%c0_31, %c0_32, %c0_33], %47 {strides = array<i32>} : memref<1x1x128xf32, #tpu.memory_space<vmem>>, vector<1x1x128xf32>,
    return
  }
  func.func @transform_0(%arg0: i32) -> (i32, i32, i32) {
    %c0_i32 = arith.constant 0 : i32
    %c0_i32_0 = arith.constant 0 : i32
    %c0_i32_1 = arith.constant 0 : i32
    return %arg0, %c0_i32, %c0_i32_0 : i32, i32, i32
  }
  func.func @transform_1(%arg0: i32) -> (i32, i32, i32) {
    %c0_i32 = arith.constant 0 : i32
    %c0_i32_0 = arith.constant 0 : i32
    %c0_i32_1 = arith.constant 0 : i32
    return %arg0, %c0_i32, %c0_i32_0 : i32, i32, i32
  }
  func.func @transform_2(%arg0: i32) -> (i32, i32) {
    %c0_i32 = arith.constant 0 : i32
    %c0_i32_0 = arith.constant 0 : i32
    %c0_i32_1 = arith.constant 0 : i32
    return %c0_i32, %c0_i32_0 : i32, i32
  }
  func.func @transform_3(%arg0: i32) -> (i32, i32) {
    %c0_i32 = arith.constant 0 : i32
    %c0_i32_0 = arith.constant 0 : i32
    %c0_i32_1 = arith.constant 0 : i32
    return %c0_i32, %c0_i32_0 : i32, i32
  }
  func.func @transform_4(%arg0: i32) -> (i32, i32) {
    %c0_i32 = arith.constant 0 : i32
    %c0_i32_0 = arith.constant 0 : i32
    %c0_i32_1 = arith.constant 0 : i32
    return %c0_i32, %c0_i32_0 : i32, i32
  }
  func.func @transform_5(%arg0: i32) -> (i32, i32) {
    %c0_i32 = arith.constant 0 : i32
    %c0_i32_0 = arith.constant 0 : i32
    %c0_i32_1 = arith.constant 0 : i32
    return %c0_i32, %c0_i32_0 : i32, i32
  }
  func.func @transform_6(%arg0: i32) -> (i32, i32) {
    %c0_i32 = arith.constant 0 : i32
    %c0_i32_0 = arith.constant 0 : i32
    %c0_i32_1 = arith.constant 0 : i32
    return %c0_i32, %c0_i32_0 : i32, i32
  }
  func.func @transform_7(%arg0: i32) -> (i32, i32, i32) {
    %c0_i32 = arith.constant 0 : i32
    %c0_i32_0 = arith.constant 0 : i32
    %c0_i32_1 = arith.constant 0 : i32
    return %arg0, %c0_i32, %c0_i32_0 : i32, i32, i32
  }
}

</mosaic_0001>

<bundles_post_ra>
// kernel: tpu_custom_call.1
= control target key start
LH: loop header
LB: loop body
LE: loop exit
PB: predicated region body
PF: predicated region fallthrough
CT: control target
= control target key end

     0   :  { %12 = vsyncpa [#allocation3], 0  ;;  %s1254_s0 = inlined_call_operand.vmem [shape: bf16[2,64,16], index: 0, kind: input, shape index: {}]   ;;  %s1255_s1 = inlined_call_operand.vmem [shape: f32[2,1,8], index: 1, kind: input, shape index: {}]   ;;  %s1256_s2 = inlined_call_operand.vmem [shape: f32[8,32], index: 2, kind: input, shape index: {}]   ;;  %s1257_s3 = inlined_call_operand.vmem [shape: f32[32,16], index: 3, kind: input, shape index: {}]   ;;  %s1258_s4 = inlined_call_operand.vmem [shape: f32[64,128], index: 4, kind: input, shape index: {}]   ;;  %s1259_s5 = inlined_call_operand.vmem [shape: f32[16,128], index: 5, kind: input, shape index: {}]   ;;  %s1260_s6 = inlined_call_operand.vmem [shape: f32[3,128], index: 6, kind: input, shape index: {}]   ;;  %s1261_s7 = inlined_call_operand.hbm [shape: f32[2,1,128], index: 7, kind: output, shape index: {}]  }
   0x1   :  { %14 = vsyncpa [#allocation3 + $0x1], 0  ;;  %s1041_s24 = smov 0   ;;  %s1043_s25 = smov 0  }
   0x2   :  { %s1045_s26 = smov 0   ;;  %s1047_s27 = smov 0  }
   0x3 LB: > { %s1062_s28 = sadd.s32 4294967295, %s996_s27   ;;  %s790_s29 = sadd.s32 4294967294, %s996_s27   ;;  %s996_s27 = sphi %s1047_s27, %s1267_s27   ;;  %s992_s26 = sphi %s1045_s26, %s1266_s26   ;;  %s988_s25 = sphi %s1043_s25, %s1265_s25   ;;  %s984_s24 = sphi %s1041_s24, %s1264_s24  }
   0x4   : > { %s1066_s30 = sadd.s32 1, %s996_s27   ;;  %s184_s8 = sadd.s32 1, %s992_s26 }
   0x5   : > { %s181_s9 = ssub.s32 %s996_s27, %s1066_s30  ;;  %p194_p0 = scmp.ne.s32.totalorder %s992_s26, %s988_s25 }
   0x6   : > { %p182_p1 = scmp.eq.s32.totalorder %s181_s9, 0  ;;  %p195_p2 = scmp.eq.s32.totalorder %s1062_s28, 1 }
   0x7   : > { %p200_p3 = scmp.ne.s32.totalorder %s988_s25, %s984_s24  ;;  %p201_p4 = scmp.eq.s32.totalorder %s790_s29, 1 }
   0x8   : > { %s1077_s10 = scalar_select %p182_p1, %s992_s26, %s184_s8  }
   0x9   : > { %p1079_p5 = por %p195_p2, %p194_p0  ;;  %p1083_p6 = por %p201_p4, %p200_p3 }
   0xa   : > { %p793_p7 = scmp.ge.s32.totalorder %s996_s27, 1  ;;  %p248_p8 = scmp.lt.s32.totalorder %s996_s27, 3 }
   0xc   : > { %p249_p9 = pnand %p793_p7, %p248_p8 }
   0xd   : > { %p282_p10 = scmp.lt.s32.totalorder (!%p249_p9), %s1062_s28, 1  ;;  %s998_s23 = smov (!%p249_p9), 120  }
   0xe   : > { %252 = sbr.rel (%p249_p9) target bundleno = 480 (0x1e0), region = 48  ;;  %s999_s29 = smov (!%p249_p9), 124  }
   0xf   : > { %s1000_s8 = smov (!%p249_p9), 116   ;;  %s280_s14 = sand.u32 (!%p249_p9), 1, %s988_s25  }
  0x10   : > { %s722_s17 = scalar_lea.hbm (!%p249_p9), %s1261_s7, %s1062_s28  ;;  %s281_s18 = scalar_lea.vmem (!%p249_p9), [#allocation2], %s280_s14 }
  0x11   : > { %s726_s20 = sshll.u32 (!%p249_p9), %s722_s17, 4  ;;  %s714_s21 = scalar_lea.sflag (!%p249_p9), [#allocation3], %s280_s14  ;;  %s727_s20 = int_to_ptr.hbm [resolvable:$true] %s726_s20 }
  0x13   : > { %v517_v0 = vld [vmem:[%s1256_s2] sm:$0xff]  ;;  %s283_s15 = scalar_select %p282_p10, %s1062_s28, 1  ;;  %vm518_vm0 = vcmask 64512   ;;  %vm306_vm1 = vcmask 31744   ;;  %v565_v27 = vld [vmem:[%s1257_s3 + $0x18] sm:$0xff]  ;;  %v564_v30 = vld [vmem:[%s1257_s3 + $0x10] sm:$0xff] }
  0x14   : > { %537 = vmatpush.msra.mxu0 %v517_v0  ;;  %585 = vmatpush.msra.mxu1 %v565_v27  ;;  %v1120_v32 = vld [vmem:[%s1260_s6] sm:$0x7]  ;;  %v563_v33 = vld [vmem:[%s1257_s3 + $0x8] sm:$0xff]  ;;  %vm569_vm6 = vcmask 261120   ;;  %vm660_vm7 = vcmask 130112   ;;  %vm664_vm8 = vcmask 195712  }
  0x15   : > { %s804_s16 = sshll.u32 %s283_s15, 5  ;;  %s289_s19 = scalar_lea.vmem %s1255_s1, %s283_s15  ;;  %v562_v35 = vld [vmem:[%s1257_s3] sm:$0xff]  ;;  %vm668_vm9 = vcmask 261312   ;;  %vm672_vm11 = vcmask 326912   ;;  %vm623_vm15 = vcmask 130048  }
  0x16   : > { %s286_s22 = scalar_lea.vmem %s1254_s0, %s804_s16  ;;  %v516_v1 = vld [vmem:[%s289_s19] sm:$0x1]  ;;  %586 = vmatpush.msra.mxu1 %v564_v30  ;;  %s724_s19 = sshll.u32 %s281_s18, 4  ;;  %s725_s19 = int_to_ptr.vmem [resolvable:$true] %s724_s19 }
  0x17   : > { %v806_v2 = vld [vmem:[%s286_s22] sm:$0xff]   ;;  %v821_v3 = vld [vmem:[%s286_s22 + $0x8] sm:$0xff]   ;;  %796 = vmatmul.msk.f32.vlgmr.msra.gmra.mxu0 %vm518_vm0, %v516_v1  ;;  %v822_v8 = vld [vmem:[%s286_s22 + $0x10] sm:$0xff]   ;;  %vm676_vm0 = vcmask 392512  }
  0x18   : > { %v811_v4 = vunpack.c.l.bf16 %v821_v3  ;;  %v812_v5 = vunpack.c.h.bf16 %v821_v3  ;;  %v807_v6 = vunpack.c.l.bf16 %v806_v2  ;;  %v808_v7 = vunpack.c.h.bf16 %v806_v2  ;;  %v823_v14 = vld [vmem:[%s286_s22 + $0x18] sm:$0xff]   ;;  %587 = vmatpush.msra.mxu1 %v563_v33  ;;  %s948_s22 = sshra.s32 %s727_s20, 4  ;;  %s949_s22 = int_to_ptr.hbm [resolvable:$true] %s948_s22 }
  0x19   : > { %v815_v11 = vunpack.c.l.bf16 %v822_v8  ;;  %v816_v12 = vunpack.c.h.bf16 %v822_v8  ;;  %v819_v15 = vunpack.c.l.bf16 %v823_v14  ;;  %v820_v16 = vunpack.c.h.bf16 %v823_v14  ;;  %p955_p0 = scmp.lt.s32.totalorder %s949_s22, %s1261_s7 }
  0x1a   : > { %v886_v9 = vpack.i.bf16 %v812_v5, %v811_v4  ;;  %v866_v10 = vpack.i.bf16 %v808_v7, %v807_v6  ;;  %v316_v18 = vsel %vm306_vm1, %v812_v5, 0.0  ;;  %v307_v19 = vsel %vm306_vm1, %v807_v6, 0.0  ;;  %588 = vmatpush.msra.mxu1 %v562_v35 }
  0x1b   : > { %v881_v13 = vpack.i.bf16 %v816_v12, %v815_v11  ;;  %v896_v17 = vpack.i.bf16 %v820_v16, %v819_v15  ;;  %v325_v20 = vsel %vm306_vm1, %v819_v15, 0.0  ;;  %v313_v21 = vsel %vm306_vm1, %v811_v4, 0.0 }
  0x1c   : > { %887 = vrot.lane.b32.xlu2 %v886_v9, %s998_s23  ;;  %867 = vrot.lane.b32.xlu0 %v866_v10, %s999_s29  ;;  %v319_v22 = vsel %vm306_vm1, %v815_v11, 0.0  ;;  %v310_v23 = vsel %vm306_vm1, %v808_v7, 0.0  ;;  %v322_v24 = vsel %vm306_vm1, %v816_v12, 0.0  ;;  %v328_v25 = vsel %vm306_vm1, %v820_v16, 0.0 }
  0x1d   : > { %877 = vrot.lane.b32.xlu1 %v866_v10, %s998_s23 }
  0x24   : > { %892 = vrot.lane.b32.xlu2 %v866_v10, %s1000_s8  ;;  %872 = vrot.lane.b32.xlu0 %v886_v9, %s999_s29 }
  0x25   : > { %882 = vrot.lane.b32.xlu1 %v881_v13, %s999_s29 }
  0x2c   : > { %907 = vrot.lane.b32.xlu2 %v886_v9, %s1000_s8  ;;  %897 = vrot.lane.b32.xlu0 %v896_v17, %s999_s29 }
  0x2d   : > { %902 = vrot.lane.b32.xlu1 %v881_v13, %s998_s23 }
  0x34   : > { %922 = vrot.lane.b32.xlu2 %v896_v17, %s1000_s8  ;;  %912 = vrot.lane.b32.xlu0 %v896_v17, %s998_s23  ;;  %s950_s23 = scalar_lea.hbm %s949_s22, 1 }
  0x35   : > { %917 = vrot.lane.b32.xlu1 %v881_v13, %s1000_s8  ;;  %p951_p11 = scmp.ne.s32.totalorder %s949_s22, %s950_s23  ;;  %s954_s8 = scalar_lea.hbm %s1261_s7, 2 }
  0x36   : > { %p956_p1 = scmp.lt.s32.totalorder %s954_s8, %s950_s23 }
  0x37   : > { %p952_p12 = pnand %p951_p11, %p1079_p5 }
  0x38   : > { %p957_p2 = por %p956_p1, %p955_p0 }
  0x39   : > { %p953_p13 = pneg %p952_p12 }
  0x3b   : > { %p958_p3 = pnand %p957_p2, %p953_p13 }
  0x5d   : > { %317 = vadd.xlane.f32.xlu2 %v316_v18 }
  0x5e   : > { %308 = vadd.xlane.f32.xlu0 %v307_v19 }
  0x5f   : > { %311 = vadd.xlane.f32.xlu1 %v310_v23 }
  0x65   : > { %326 = vadd.xlane.f32.xlu2 %v325_v20 }
  0x66   : > { %314 = vadd.xlane.f32.xlu0 %v313_v21 }
  0x6e   : > { %320 = vadd.xlane.f32.xlu0 %v319_v22 }
  0x76   : > { %323 = vadd.xlane.f32.xlu0 %v322_v24  ;;  %v1111_v29 = vpop.permute.xlu2 %887 }
  0x77   : > { %v889_v59 = vunpack.i.l.bf16 %v1111_v29  ;;  %v890_v7 = vunpack.i.h.bf16 %v1111_v29 }
  0x79   : > { %v433_v0 = vsel %vm306_vm1, %v889_v59, 0.0  ;;  %v436_v15 = vsel %vm306_vm1, %v890_v7, 0.0 }
  0x7e   : > { %329 = vadd.xlane.f32.xlu0 %v328_v25  ;;  %v893_v46 = vpop.permute.xlu2 %892 }
  0x7f   : > { %v894_v49 = vunpack.i.l.bf16 %v893_v46  ;;  %v895_v19 = vunpack.i.h.bf16 %v893_v46 }
  0x81   : > { %v483_v54 = vsel %vm306_vm1, %v894_v49, 0.0  ;;  %v486_v23 = vsel %vm306_vm1, %v895_v19, 0.0 }
  0x86   : > { %v908_v1 = vpop.permute.xlu2 %907 }
  0x87   : > { %v910_v6 = vunpack.i.h.bf16 %v908_v1  ;;  %v909_v20 = vunpack.i.l.bf16 %v908_v1 }
  0x89   : > { %v492_v12 = vsel %vm306_vm1, %v910_v6, 0.0  ;;  %v489_v24 = vsel %vm306_vm1, %v909_v20, 0.0 }
  0x8e   : > { %v868_v26 = vpop.permute.xlu0 %867  ;;  %v923_v25 = vpop.permute.xlu2 %922 }
  0x8f   : > { %v869_v28 = vunpack.i.l.bf16 %v868_v26  ;;  %v870_v37 = vunpack.i.h.bf16 %v868_v26  ;;  %v878_v40 = vpop.permute.xlu1 %877 }
  0x90   : > { %v880_v47 = vunpack.i.h.bf16 %v878_v40  ;;  %v879_v48 = vunpack.i.l.bf16 %v878_v40 }
  0x91   : > { %v371_v31 = vsel %vm306_vm1, %v869_v28, 0.0  ;;  %v374_v44 = vsel %vm306_vm1, %v870_v37, 0.0  ;;  %v925_v28 = vunpack.i.h.bf16 %v923_v25 }
  0x92   : > { %372 = vadd.xlane.f32.xlu2 %v371_v31  ;;  %v427_v52 = vsel %vm306_vm1, %v879_v48, 0.0  ;;  %v430_v53 = vsel %vm306_vm1, %v880_v47, 0.0 }
  0x93   : > { %v504_v33 = vsel %vm306_vm1, %v925_v28, 0.0 }
  0x94   : > { %v539_v34 = vpop.f32.mrf.mxu0 }
  0x95   : > { %v540_v36 = vadd.f32 %v539_v34, %v1120_v32 }
  0x96   : > { %v873_v39 = vpop.permute.xlu0 %872 }
  0x97   : > { %v797_v38 = vmul.f32 -1.442695, %v540_v36  ;;  %v875_v41 = vunpack.i.h.bf16 %v873_v39  ;;  %v874_v42 = vunpack.i.l.bf16 %v873_v39  ;;  %v883_v55 = vpop.permute.xlu1 %882  ;;  %v924_v39 = vunpack.i.l.bf16 %v923_v25  ;;  %v616_v25 = vld [vmem:[%s1258_s4 + $0x18] sm:$0xff] }
  0x98   : > { %v884_v57 = vunpack.i.l.bf16 %v883_v55  ;;  %v885_v8 = vunpack.i.h.bf16 %v883_v55 }
  0x99   : > { %926 = vpow2.f32 %v797_v38  ;;  %v377_v43 = vsel %vm306_vm1, %v874_v42, 0.0  ;;  %v380_v45 = vsel %vm306_vm1, %v875_v41, 0.0  ;;  %v501_v41 = vsel %vm306_vm1, %v924_v39, 0.0 }
  0x9a   : > { %378 = vadd.xlane.f32.xlu1 %v377_v43  ;;  %375 = vadd.xlane.f32.xlu2 %v374_v44  ;;  %v383_v61 = vsel %vm306_vm1, %v884_v57, 0.0  ;;  %v386_v14 = vsel %vm306_vm1, %v885_v8, 0.0 }
  0x9b   : > { %381 = vadd.xlane.f32.xlu0 %v380_v45 }
  0x9e   : > { %v1135_v56 = vpop.permute.xlu0 %897 }
  0x9f   : > { %v927_v50 = vpop.eup %926  ;;  %v899_v58 = vunpack.i.l.bf16 %v1135_v56  ;;  %v903_v21 = vpop.permute.xlu1 %902  ;;  %v900_v35 = vunpack.i.h.bf16 %v1135_v56 }
  0xa0   : > { %v545_v51 = vadd.f32 1.0, %v927_v50  ;;  %v905_v26 = vunpack.i.h.bf16 %v903_v21  ;;  %v904_v27 = vunpack.i.l.bf16 %v903_v21 }
  0xa1   : > { %v389_v63 = vsel %vm306_vm1, %v899_v58, 0.0  ;;  %v392_v37 = vsel %vm306_vm1, %v900_v35, 0.0 }
  0xa2   : > { %928 = vrcp.f32 %v545_v51  ;;  %428 = vadd.xlane.f32.xlu1 %v427_v52  ;;  %431 = vadd.xlane.f32.xlu2 %v430_v53  ;;  %v557_v3 = vand.u32 2147483648, %v545_v51  ;;  %v555_v5 = vand.u32 2147483647, %v545_v51  ;;  %vm551_vm3 = vweird.f32 %v545_v51 }
  0xa3   : > { %484 = vadd.xlane.f32.xlu0 %v483_v54  ;;  %v439_v29 = vsel %vm306_vm1, %v904_v27, 0.0  ;;  %v442_v30 = vsel %vm306_vm1, %v905_v26, 0.0 }
  0xa4   : > { %v558_v10 = vor.u32 1.1754944e-38, %v557_v3  ;;  %vm556_vm5 = vcmp.eq.f32.partialorder %v555_v5, 8.507059e+37  ;;  %v619_v5 = vld [vmem:[%s1258_s4 + $0x30] sm:$0xff] }
  0xa6   : > { %v913_v16 = vpop.permute.xlu0 %912 }
  0xa7   : > { %v915_v18 = vunpack.i.h.bf16 %v913_v16  ;;  %v918_v31 = vpop.permute.xlu1 %917  ;;  %v914_v38 = vunpack.i.l.bf16 %v913_v16 }
  0xa8   : > { %v929_v60 = vpop.eup %928  ;;  %v919_v34 = vunpack.i.l.bf16 %v918_v31  ;;  %v920_v42 = vunpack.i.h.bf16 %v918_v31  ;;  %v621_v31 = vld [vmem:[%s1259_s5] sm:$0xff] }
  0xa9   : > { %v547_v62 = vmul.f32 %v929_v60, %v545_v51  ;;  %vm552_vm2 = vweird.f32 %v929_v60  ;;  %v448_v22 = vsel %vm306_vm1, %v915_v18, 0.0  ;;  %v445_v40 = vsel %vm306_vm1, %v914_v38, 0.0  ;;  %v613_v38 = vld [vmem:[%s1258_s4] sm:$0xff] }
  0xaa   : > { %384 = vadd.xlane.f32.xlu1 %v383_v61  ;;  %434 = vadd.xlane.f32.xlu2 %v433_v0  ;;  %vm553_vm4 = vmor %vm551_vm3, %vm552_vm2  ;;  %v498_v43 = vsel %vm306_vm1, %v920_v42, 0.0  ;;  %vm684_vm2 = vcmask 523712   ;;  %vm686_vm3 = vcmask 523264  }
  0xab   : > { %v548_v2 = vsub.f32 1.0, %v547_v62  ;;  %390 = vadd.xlane.f32.xlu0 %v389_v63  ;;  %v655_v62 = vlaneseq }
  0xad   : > { %v549_v4 = vmul.f32 %v929_v60, %v548_v2  ;;  %v620_v2 = vld [vmem:[%s1258_s4 + $0x38] sm:$0xff]  ;;  %v1178_v6 = vand.u32 127, %v655_v62 }
  0xae   : > { %697 = vmatpush.msra.mxu3 %v620_v2 }
  0xaf   : > { %v550_v9 = vadd.f32 %v929_v60, %v549_v4  ;;  %v662_v16 = vadd.s32 4294967280, %v1178_v6  ;;  %v666_v18 = vadd.s32 4294967272, %v1178_v6 }
  0xb0   : > { %698 = vmatpush.msra.mxu3 %v619_v5 }
  0xb1   : > { %v554_v11 = vsel %vm553_vm4, %v929_v60, %v550_v9 }
  0xb2   : > { %v559_v13 = vsel %vm556_vm5, %v558_v10, %v554_v11  ;;  %387 = vadd.xlane.f32.xlu1 %v386_v14  ;;  %437 = vadd.xlane.f32.xlu2 %v436_v15  ;;  %v618_v10 = vld [vmem:[%s1258_s4 + $0x28] sm:$0xff]  ;;  %v658_v11 = vadd.s32 4294967288, %v1178_v6 }
  0xb3   : > { %v561_v17 = vmul.f32 %v559_v13, %v540_v36  ;;  %493 = vadd.xlane.f32.xlu0 %v492_v12  ;;  %v495_v36 = vsel %vm306_vm1, %v919_v34, 0.0  ;;  %699 = vmatpush.msra.mxu3 %v618_v10  ;;  %v614_v34 = vld [vmem:[%s1258_s4 + $0x8] sm:$0xff]  ;;  %vm680_vm1 = vcmask 458112  }
  0xb5   : > { %798 = vmatmul.msk.f32.vlgmr.msra.gmra.mxu1 %vm569_vm6, %v561_v17  ;;  %v617_v17 = vld [vmem:[%s1258_s4 + $0x20] sm:$0xff] }
  0xb6   : > { %700 = vmatpush.msra.mxu3 %v617_v17 }
  0xb8   : > { %701 = vmatpush.msra.mxu3 %v616_v25 }
  0xba   : > { %487 = vadd.xlane.f32.xlu1 %v486_v23  ;;  %490 = vadd.xlane.f32.xlu2 %v489_v24  ;;  %v567_v24 = vrot.slane %v1120_v32, 1 }
  0xbb   : > { %449 = vadd.xlane.f32.xlu0 %v448_v22 }
  0xc2   : > { %440 = vadd.xlane.f32.xlu1 %v439_v29  ;;  %443 = vadd.xlane.f32.xlu2 %v442_v30  ;;  %v622_v29 = vld [vmem:[%s1259_s5 + $0x8] sm:$0xff]  ;;  %v615_v30 = vld [vmem:[%s1258_s4 + $0x10] sm:$0xff] }
  0xc3   : > { %505 = vadd.xlane.f32.xlu0 %v504_v33  ;;  %641 = vmatpush.msra.mxu2 %v622_v29 }
  0xc4   : > { %702 = vmatpush.msra.mxu3 %v615_v30 }
  0xc5   : > { %642 = vmatpush.msra.mxu2 %v621_v31 }
  0xc6   : > { %703 = vmatpush.msra.mxu3 %v614_v34 }
  0xc8   : > { %704 = vmatpush.msra.mxu3 %v613_v38 }
  0xca   : > { %393 = vadd.xlane.f32.xlu1 %v392_v37  ;;  %496 = vadd.xlane.f32.xlu2 %v495_v36 }
  0xd0   : > { %v318_v47 = vpop.xlane.xlu2 %317 }
  0xd1   : > { %v309_v44 = vpop.xlane.xlu0 %308 }
  0xd2   : > { %446 = vadd.xlane.f32.xlu1 %v445_v40  ;;  %502 = vadd.xlane.f32.xlu2 %v501_v41  ;;  %v312_v50 = vpop.xlane.xlu1 %311 }
  0xd8   : > { %v1162_v49 = vpop.xlane.xlu2 %326 }
  0xd9   : > { %v315_v45 = vpop.xlane.xlu0 %314 }
  0xda   : > { %499 = vadd.xlane.f32.xlu1 %v498_v43 }
  0xe1   : > { %v1158_v46 = vpop.xlane.xlu0 %320 }
  0xe9   : > { %v1160_v48 = vpop.xlane.xlu0 %323 }
  0xf1   : > { %v1164_v51 = vpop.xlane.xlu0 %329 }
 0x105   : > { %v373_v52 = vpop.xlane.xlu2 %372 }
 0x106   : > { %v395_v1 = vadd.f32 %v373_v52, %v309_v44 }
 0x10d   : > { %v379_v53 = vpop.xlane.xlu1 %378  ;;  %v376_v54 = vpop.xlane.xlu2 %375 }
 0x10e   : > { %v382_v55 = vpop.xlane.xlu0 %381  ;;  %v397_v7 = vadd.f32 %v379_v53, %v315_v45  ;;  %v396_v8 = vadd.f32 %v376_v54, %v312_v50 }
 0x10f   : > { %v398_v3 = vadd.f32 %v382_v55, %v318_v47 }
 0x115   : > { %v429_v56 = vpop.xlane.xlu1 %428  ;;  %v432_v57 = vpop.xlane.xlu2 %431 }
 0x116   : > { %v485_v58 = vpop.xlane.xlu0 %484  ;;  %v451_v4 = vadd.f32 %v429_v56, %v395_v1  ;;  %v452_v12 = vadd.f32 %v432_v57, %v396_v8  ;;  %v674_v8 = vadd.s32 4294967256, %v1178_v6 }
 0x118   : > { %v507_v13 = vadd.f32 %v485_v58, %v451_v4 }
 0x11a   : > { %v657_v26 = vperm.slane %v507_v13, %v1178_v6 }
 0x11d   : > { %v1166_v59 = vpop.xlane.xlu1 %384  ;;  %v435_v60 = vpop.xlane.xlu2 %434 }
 0x11e   : > { %v1168_v61 = vpop.xlane.xlu0 %390  ;;  %v453_v14 = vadd.f32 %v435_v60, %v397_v7  ;;  %v399_v54 = vadd.f32 %v1166_v59, %v1158_v46 }
 0x11f   : > { %v401_v58 = vadd.f32 %v1168_v61, %v1162_v49 }
 0x125   : > { %v1170_v63 = vpop.xlane.xlu1 %387  ;;  %v438_v0 = vpop.xlane.xlu2 %437 }
 0x126   : > { %v454_v9 = vadd.f32 %v438_v0, %v398_v3  ;;  %v494_v15 = vpop.xlane.xlu0 %493  ;;  %v670_v0 = vadd.s32 4294967264, %v1178_v6  ;;  %v400_v1 = vadd.f32 %v1170_v63, %v1160_v48  ;;  %v678_v63 = vadd.s32 4294967248, %v1178_v6 }
 0x128   : > { %v510_v21 = vadd.f32 %v494_v15, %v454_v9 }
 0x12a   : > { %v667_v35 = vperm.slane %v510_v21, %v666_v18 }
 0x12d   : > { %v488_v19 = vpop.xlane.xlu1 %487  ;;  %v491_v20 = vpop.xlane.xlu2 %490 }
 0x12e   : > { %v508_v22 = vadd.f32 %v488_v19, %v452_v12  ;;  %v509_v23 = vadd.f32 %v491_v20, %v453_v14  ;;  %v450_v52 = vpop.xlane.xlu0 %449 }
 0x130   : > { %v659_v27 = vperm.slane %v508_v22, %v658_v11  ;;  %v663_v28 = vperm.slane %v509_v23, %v662_v16 }
 0x132   : > { %v590_v33 = vpop.f32.mrf.mxu1  ;;  %v661_v36 = vsel %vm660_vm7, %v659_v27, %v657_v26 }
 0x133   : > { %v591_v37 = vadd.f32 %v590_v33, %v567_v24  ;;  %v665_v39 = vsel %vm664_vm8, %v663_v28, %v661_v36  ;;  %v709_v24 = vrot.slane %v1120_v32, 2 }
 0x134   : > { %v669_v41 = vsel %vm668_vm9, %v667_v35, %v665_v39 }
 0x135   : > { %v799_v40 = vmul.f32 -1.442695, %v591_v37  ;;  %v441_v42 = vpop.xlane.xlu1 %440  ;;  %v444_v43 = vpop.xlane.xlu2 %443 }
 0x136   : > { %v455_v60 = vadd.f32 %v441_v42, %v399_v54  ;;  %v456_v49 = vadd.f32 %v444_v43, %v400_v1  ;;  %v506_v10 = vpop.xlane.xlu0 %505 }
 0x137   : > { %930 = vpow2.f32 %v799_v40 }
 0x13d   : > { %v931_v44 = vpop.eup %930  ;;  %v394_v47 = vpop.xlane.xlu1 %393 }
 0x13e   : > { %v596_v45 = vadd.f32 1.0, %v931_v44  ;;  %v497_v50 = vpop.xlane.xlu2 %496  ;;  %v402_v57 = vadd.f32 %v394_v47, %v1164_v51  ;;  %v682_v51 = vadd.s32 4294967240, %v1178_v6 }
 0x13f   : > { %v511_v3 = vadd.f32 %v497_v50, %v455_v60 }
 0x140   : > { %932 = vrcp.f32 %v596_v45  ;;  %v608_v2 = vand.u32 2147483648, %v596_v45  ;;  %v606_v46 = vand.u32 2147483647, %v596_v45  ;;  %v458_v59 = vadd.f32 %v450_v52, %v402_v57 }
 0x141   : > { %vm602_vm12 = vweird.f32 %v596_v45  ;;  %v671_v48 = vperm.slane %v511_v3, %v670_v0 }
 0x142   : > { %v609_v9 = vor.u32 1.1754944e-38, %v608_v2  ;;  %vm607_vm14 = vcmp.eq.f32.partialorder %v606_v46, 8.507059e+37  ;;  %v514_v14 = vadd.f32 %v506_v10, %v458_v59 }
 0x143   : > { %v673_v19 = vsel %vm672_vm11, %v671_v48, %v669_v41 }
 0x144   : > { %v683_v21 = vperm.slane %v514_v14, %v682_v51 }
 0x145   : > { %v447_v55 = vpop.xlane.xlu1 %446 }
 0x146   : > { %v933_v53 = vpop.eup %932  ;;  %v457_v4 = vadd.f32 %v447_v55, %v401_v58  ;;  %v503_v61 = vpop.xlane.xlu2 %502 }
 0x147   : > { %v598_v56 = vmul.f32 %v933_v53, %v596_v45  ;;  %vm603_vm10 = vweird.f32 %v933_v53 }
 0x148   : > { %vm604_vm13 = vmor %vm602_vm12, %vm603_vm10  ;;  %v513_v11 = vadd.f32 %v503_v61, %v457_v4 }
 0x149   : > { %v599_v62 = vsub.f32 1.0, %v598_v56 }
 0x14a   : > { %v679_v20 = vperm.slane %v513_v11, %v678_v63 }
 0x14b   : > { %v600_v5 = vmul.f32 %v933_v53, %v599_v62 }
 0x14d   : > { %v601_v7 = vadd.f32 %v933_v53, %v600_v5  ;;  %v500_v12 = vpop.xlane.xlu1 %499 }
 0x14e   : > { %v512_v15 = vadd.f32 %v500_v12, %v456_v49 }
 0x14f   : > { %v605_v13 = vsel %vm604_vm13, %v933_v53, %v601_v7 }
 0x150   : > { %v610_v16 = vsel %vm607_vm14, %v609_v9, %v605_v13  ;;  %v675_v18 = vperm.slane %v512_v15, %v674_v8 }
 0x151   : > { %v612_v17 = vmul.f32 %v610_v16, %v591_v37 }
 0x152   : > { %v677_v6 = vsel %vm676_vm0, %v675_v18, %v673_v19 }
 0x153   : > { %800 = vmatmul.msk.f32.vlgmr.msra.gmra.mxu2 %vm623_vm15, %v612_v17  ;;  %v681_v22 = vsel %vm680_vm1, %v679_v20, %v677_v6 }
 0x154   : > { %v685_v23 = vsel %vm684_vm2, %v683_v21, %v681_v22 }
 0x155   : > { %801 = vmatmul.msk.f32.vlgmr.msra.gmra.mxu3 %vm686_vm3, %v685_v23 }
 0x1d6   : > { %v644_v25 = vpop.f32.mrf.mxu2 }
 0x1d8   : > { %v706_v26 = vpop.f32.mrf.mxu3 }
 0x1d9   : > { %v707_v27 = vadd.f32 %v706_v26, %v644_v25 }
 0x1db   : > { %v711_v28 = vadd.f32 %v709_v24, %v707_v27 }
 0x1dd   : > { %712 = vst [vmem:[%s281_s18] sm:$0x1] %v711_v28 }
 0x1de   : > { %961 = shalt.err (!%p958_p3)
}
 0x1df   : > { %824 = dma.vmem_to_hbm [thread:$0]  (%p1079_p5), %s725_s19, 16, %s727_s20, %s714_s21  }
 0x1e0 PF: > { %p830_p4 = scmp.ge.s32.totalorder %s996_s27, 2  ;;  %s738_s14 = sand.u32 1, %s984_s24  }
 0x1e1   : > { %s739_s15 = scalar_lea.sflag [#allocation3], %s738_s14 }
 0x1e2   : > { %p827_p7 = pnand %p830_p4, %p1083_p6 }
 0x1e4   : > { %p828_p8 = pneg %p827_p7 }
 0x1e6   : > { %979 = dma.done.wait (%p828_p8), %s739_s15, 16  }
 0x1e7   : > { %981 = vsyncadd (%p828_p8), %s739_s15, 4294967280  ;;  %p17_p9 = scmp.ge.s32.totalorder %s1066_s30, 4   ;;  %s1264_s24 = smov %s988_s25 }
 0x1e8   : > { %s1265_s25 = smov %s992_s26  ;;  %s1266_s26 = smov %s1077_s10 }
 0x1e9   : > { %s1267_s27 = smov %s1066_s30  ;;  %19 = sbr.rel (!%p17_p9) target bundleno = 3 (0x3), region = 86 }
 0x1ee   :  { %744 = vsyncpa [#allocation3], 1 }
 0x1ef   :  { %746 = vsyncpa [#allocation3 + $0x1], 1 }

</bundles_post_ra>
